<compile_context>
chip_gen: v6e
topology: v6e:2x2x1
jax: 0.10.0
libtpu: 0.0.40
codegen_flags: <defaults>
</compile_context>

<pallas_src>
import math
import functools

import jax
import jax.numpy as jnp
from jax.experimental import pallas as pl
from jax.experimental.pallas import tpu as pltpu


_GELU_C = math.sqrt(2.0 / math.pi)


def _tanh_gelu(x):
    # TODO(synk): HF ACT2FN["gelu"] is the exact erf-GELU; tanh approximation is
    # used here so the kernel lowers to EUP tanh on all TPU generations.
    return 0.5 * x * (1.0 + jnp.tanh(_GELU_C * (x + 0.044715 * (x * x * x))))


def _encoder_layer_kernel(x_ref, ln1_g_ref, ln1_b_ref,
                          wqkv_ref, bqkv_ref, wproj_ref, bproj_ref,
                          ln2_g_ref, ln2_b_ref,
                          wfc1_ref, bfc1_ref, wfc2_ref, bfc2_ref,
                          *rest,
                          head_dim, eps, compute_dtype, has_mask):
    if has_mask:
        mask_ref, out_ref, xn_s, acc_s = rest
    else:
        out_ref, xn_s, acc_s = rest

    h = pl.program_id(1)
    last_h = pl.num_programs(1) - 1

    # ---- once per batch element (first head step): LayerNorm1 + accumulator init
    @pl.when(h == 0)
    def _init():
        x = x_ref[0].astype(jnp.float32)                       # (S, H)
        mu = jnp.mean(x, axis=-1, keepdims=True)
        xc = x - mu
        var = jnp.mean(xc * xc, axis=-1, keepdims=True)
        xn = xc * jax.lax.rsqrt(var + eps)
        xn_s[...] = xn * ln1_g_ref[...] + ln1_b_ref[...]
        acc_s[...] = jnp.zeros_like(acc_s)

    # ---- per-head: fused QKV, attention, fold context into output projection
    xn = xn_s[...].astype(compute_dtype)                       # (S, H)
    qkv = jnp.dot(xn, wqkv_ref[0],
                  preferred_element_type=jnp.float32) + bqkv_ref[0]   # (S, 3D) f32
    D = head_dim
    q = qkv[:, :D] * (D ** -0.5)                               # fold scale into q once
    k = qkv[:, D:2 * D]
    v = qkv[:, 2 * D:]

    scores = jax.lax.dot_general(                              # (S, S), no explicit k.T
        q.astype(compute_dtype), k.astype(compute_dtype),
        dimension_numbers=(((1,), (1,)), ((), ())),
        preferred_element_type=jnp.float32)

    m = jnp.max(scores, axis=-1, keepdims=True)
    e = jnp.exp(scores - m)
    denom = jnp.sum(e, axis=-1, keepdims=True)
    p = e * pl.reciprocal(denom, approx=(compute_dtype != jnp.float32))
    if has_mask:
        p = p * mask_ref[0, 0]                                 # multiplicative head_mask
    # TODO(synk): attention dropout omitted (eval mode); output_attentions path skipped.

    ctx = jnp.dot(p.astype(compute_dtype), v.astype(compute_dtype),
                  preferred_element_type=jnp.float32)          # (S, D)
    acc_s[...] += jnp.dot(ctx.astype(compute_dtype), wproj_ref[0],
                          preferred_element_type=jnp.float32)  # (S, H) lane-dense acc

    # ---- once per batch element (last head): proj bias + residual, LN2, MLP, store
    @pl.when(h == last_h)
    def _finalize():
        residual = x_ref[0].astype(jnp.float32)
        h1 = acc_s[...] + bproj_ref[...] + residual            # (S, H)
        mu = jnp.mean(h1, axis=-1, keepdims=True)
        hc = h1 - mu
        var = jnp.mean(hc * hc, axis=-1, keepdims=True)
        h1n = hc * jax.lax.rsqrt(var + eps) * ln2_g_ref[...] + ln2_b_ref[...]
        t = jnp.dot(h1n.astype(compute_dtype), wfc1_ref[...],
                    preferred_element_type=jnp.float32) + bfc1_ref[...]
        t = _tanh_gelu(t)
        o = jnp.dot(t.astype(compute_dtype), wfc2_ref[...],
                    preferred_element_type=jnp.float32) + bfc2_ref[...]
        out_ref[0] = (o + h1).astype(out_ref.dtype)            # single lane-dense store


def chexagent_encoder_layer(hidden_states, params, *, num_heads,
                            eps=1e-6, head_mask=None,
                            compute_dtype=jnp.float32):
    """Fused CheXagentEncoderLayer forward.

    hidden_states: (B, S, H) float32.
    params (PyTorch layouts): wqkv (3H,H), bqkv (3H,), wproj (H,H), bproj (H,),
      ln1_g/ln1_b/ln2_g/ln2_b (H,), wfc1 (I,H), bfc1 (I,), wfc2 (H,I), bfc2 (H,).
    head_mask: optional multiplicative mask broadcastable to (B, NH, S, S)
      (the `attention_mask` the encoder layer forwards as head_mask).
    """
    B, S, H = hidden_states.shape
    NH = num_heads
    D = H // NH
    I = params["wfc1"].shape[0]
    f32 = jnp.float32

    # ---- parameter layout plumbing (wrapper-side, done once by XLA) ----
    # fused QKV weight -> per-head (NH, H, 3D) so kernel does xn @ w_h -> [q|k|v]
    wqkv_h = (jnp.asarray(params["wqkv"], f32).T              # (H, 3H), x@W form
              .reshape(H, 3, NH, D)
              .transpose(2, 0, 1, 3)
              .reshape(NH, H, 3 * D)).astype(compute_dtype)
    bqkv_h = (jnp.asarray(params["bqkv"], f32)
              .reshape(3, NH, D)
              .transpose(1, 0, 2)
              .reshape(NH, 1, 3 * D))
    # output projection -> per-head (NH, D, H) row blocks of Wproj^T
    wproj_h = (jnp.asarray(params["wproj"], f32).T
               .reshape(NH, D, H)).astype(compute_dtype)
    wfc1_t = jnp.asarray(params["wfc1"], f32).T.astype(compute_dtype)   # (H, I)
    wfc2_t = jnp.asarray(params["wfc2"], f32).T.astype(compute_dtype)   # (I, H)

    row = lambda v: jnp.asarray(v, f32).reshape(1, -1)
    ln1_g, ln1_b = row(params["ln1_g"]), row(params["ln1_b"])
    ln2_g, ln2_b = row(params["ln2_g"]), row(params["ln2_b"])
    bproj, bfc1, bfc2 = row(params["bproj"]), row(params["bfc1"]), row(params["bfc2"])

    args = [hidden_states, ln1_g, ln1_b, wqkv_h, bqkv_h, wproj_h, bproj,
            ln2_g, ln2_b, wfc1_t, bfc1, wfc2_t, bfc2]

    const = lambda shape: pl.BlockSpec(shape, lambda b, h: (0,) * len(shape))
    in_specs = [
        pl.BlockSpec((1, S, H), lambda b, h: (b, 0, 0)),        # hidden_states
        const((1, H)), const((1, H)),                           # LN1 gamma/beta
        pl.BlockSpec((1, H, 3 * D), lambda b, h: (h, 0, 0)),    # per-head QKV weight
        pl.BlockSpec((1, 1, 3 * D), lambda b, h: (h, 0, 0)),    # per-head QKV bias
        pl.BlockSpec((1, D, H), lambda b, h: (h, 0, 0)),        # per-head proj rows
        const((1, H)),                                          # proj bias
        const((1, H)), const((1, H)),                           # LN2 gamma/beta
        const((H, I)), const((1, I)),                           # fc1
        const((I, H)), const((1, H)),                           # fc2
    ]

    has_mask = head_mask is not None
    if has_mask:
        mask = jnp.broadcast_to(jnp.asarray(head_mask, f32), (B, NH, S, S))
        args.append(mask)
        in_specs.append(pl.BlockSpec((1, 1, S, S), lambda b, h: (b, h, 0, 0)))

    # advisory cost estimate so XLA schedules neighbouring ops sensibly
    flops = 2 * B * (3 * S * H * H + 2 * NH * S * S * D + S * H * H + 2 * S * H * I)
    transcendentals = B * NH * S * S + B * S * I
    weight_bytes = sum(int(a.size) * a.dtype.itemsize
                       for a in (wqkv_h, wproj_h, wfc1_t, wfc2_t))
    bytes_accessed = 2 * int(hidden_states.size) * 4 + weight_bytes
    if has_mask:
        bytes_accessed += int(mask.size) * 4

    kernel = functools.partial(_encoder_layer_kernel, head_dim=D, eps=eps,
                               compute_dtype=compute_dtype, has_mask=has_mask)

    out = pl.pallas_call(
        kernel,
        out_shape=jax.ShapeDtypeStruct((B, S, H), hidden_states.dtype),
        grid_spec=pltpu.PrefetchScalarGridSpec(
            num_scalar_prefetch=0,
            grid=(B, NH),                                       # b parallel, heads sequential
            in_specs=in_specs,
            out_specs=pl.BlockSpec((1, S, H), lambda b, h: (b, 0, 0)),
            scratch_shapes=[pltpu.VMEM((S, H), jnp.float32),    # LayerNorm1 output
                            pltpu.VMEM((S, H), jnp.float32)],   # projected-context acc
        ),
        compiler_params=pltpu.CompilerParams(
            dimension_semantics=("parallel", "arbitrary"),
            # Leaves headroom on v7x's 64 MiB VMEM; production QFormer/vision sizes
            # (H=768/1408, S~577+) should re-derive this and (if needed) tile S.
            vmem_limit_bytes=48 * 1024 * 1024),
        cost_estimate=pl.CostEstimate(flops=int(flops),
                                      transcendentals=int(transcendentals),
                                      bytes_accessed=int(bytes_accessed)),
    )(*args)
    return out


def _reference(x, params, num_heads, eps, head_mask=None):
    """Pure-JAX mirror of the PyTorch CheXagentEncoderLayer forward (eval mode)."""
    B, S, H = x.shape
    D = H // num_heads

    def layer_norm(t, g, b):
        mu = jnp.mean(t, axis=-1, keepdims=True)
        var = jnp.mean((t - mu) ** 2, axis=-1, keepdims=True)
        return (t - mu) / jnp.sqrt(var + eps) * g + b

    residual = x
    hs = layer_norm(x, params["ln1_g"], params["ln1_b"])
    mixed = hs @ params["wqkv"].T + params["bqkv"]
    mixed = mixed.reshape(B, S, 3, num_heads, D).transpose(2, 0, 3, 1, 4)
    q, k, v = mixed[0], mixed[1], mixed[2]
    scores = jnp.einsum("bhqd,bhkd->bhqk", q, k) * (D ** -0.5)
    probs = jax.nn.softmax(scores, axis=-1)
    if head_mask is not None:
        probs = probs * head_mask
    ctx = jnp.einsum("bhqk,bhkd->bhqd", probs, v)
    ctx = ctx.transpose(0, 2, 1, 3).reshape(B, S, H)
    attn_out = ctx @ params["wproj"].T + params["bproj"]
    hs = attn_out + residual
    residual = hs
    t = layer_norm(hs, params["ln2_g"], params["ln2_b"])
    t = t @ params["wfc1"].T + params["bfc1"]
    t = _tanh_gelu(t)
    t = t @ params["wfc2"].T + params["bfc2"]
    return t + residual


if __name__ == "__main__":
    B, S, H, NH = 2, 8, 32, 4
    I = 4 * H
    eps = 1e-6

    key = jax.random.PRNGKey(0)
    ks = jax.random.split(key, 12)

    x = jax.random.normal(ks[0], (B, S, H), dtype=jnp.float32)

    def lin(k, out_dim, in_dim):
        return jax.random.normal(k, (out_dim, in_dim), jnp.float32) / math.sqrt(in_dim)

    params = {
        "wqkv": lin(ks[1], 3 * H, H),
        # module semantics: k-bias is fixed at zero, q/v biases learned
        "bqkv": jnp.concatenate([
            0.02 * jax.random.normal(ks[2], (H,), jnp.float32),
            jnp.zeros((H,), jnp.float32),
            0.02 * jax.random.normal(ks[3], (H,), jnp.float32)]),
        "wproj": lin(ks[4], H, H),
        "bproj": 0.02 * jax.random.normal(ks[5], (H,), jnp.float32),
        "ln1_g": 1.0 + 0.1 * jax.random.normal(ks[6], (H,), jnp.float32),
        "ln1_b": 0.1 * jax.random.normal(ks[7], (H,), jnp.float32),
        "ln2_g": 1.0 + 0.1 * jax.random.normal(ks[8], (H,), jnp.float32),
        "ln2_b": 0.1 * jax.random.normal(ks[9], (H,), jnp.float32),
        "wfc1": lin(ks[10], I, H),
        "bfc1": jnp.zeros((I,), jnp.float32),
        "wfc2": lin(ks[11], H, I),
        "bfc2": jnp.zeros((H,), jnp.float32),
    }

    # multiplicative head mask (what the encoder layer passes as `head_mask`);
    # broadcastable to (B, NH, S, S) — zero out the last 2 keys for batch 1, head 0.
    head_mask = jnp.ones((B, NH, 1, S), jnp.float32)
    head_mask = head_mask.at[1, 0, :, S - 2:].set(0.0)

    # --- f32 compute, no mask (the common attention_mask=None case) ---
    out = chexagent_encoder_layer(x, params, num_heads=NH, eps=eps,
                                  head_mask=None, compute_dtype=jnp.float32)
    jax.block_until_ready(out)
    ref = _reference(x, params, NH, eps, head_mask=None)
    assert jnp.allclose(out, ref, atol=5e-3, rtol=5e-3), \
        float(jnp.max(jnp.abs(out - ref)))

    # --- bf16 MXU inputs (f32 accumulation/softmax/LN) with a head mask ---
    out_bf16 = chexagent_encoder_layer(x, params, num_heads=NH, eps=eps,
                                       head_mask=head_mask,
                                       compute_dtype=jnp.bfloat16)
    jax.block_until_ready(out_bf16)
    ref_m = _reference(x, params, NH, eps, head_mask=head_mask)
    assert jnp.allclose(out_bf16, ref_m, atol=7e-2, rtol=7e-2), \
        float(jnp.max(jnp.abs(out_bf16 - ref_m)))

    print("KERNEL_OK")
</pallas_src>

<mosaic_0001>
module attributes {stable_mosaic.version = 11 : i64} {
  func.func @_encoder_layer_kernel(%arg0: i32, %arg1: i32, %arg2: memref<1x8x32xf32, #tpu.memory_space<vmem>>, %arg3: memref<1x32xf32, #tpu.memory_space<vmem>>, %arg4: memref<1x32xf32, #tpu.memory_space<vmem>>, %arg5: memref<1x32x24xf32, #tpu.memory_space<vmem>>, %arg6: memref<1x1x24xf32, #tpu.memory_space<vmem>>, %arg7: memref<1x8x32xf32, #tpu.memory_space<vmem>>, %arg8: memref<1x32xf32, #tpu.memory_space<vmem>>, %arg9: memref<1x32xf32, #tpu.memory_space<vmem>>, %arg10: memref<1x32xf32, #tpu.memory_space<vmem>>, %arg11: memref<32x128xf32, #tpu.memory_space<vmem>>, %arg12: memref<1x128xf32, #tpu.memory_space<vmem>>, %arg13: memref<128x32xf32, #tpu.memory_space<vmem>>, %arg14: memref<1x32xf32, #tpu.memory_space<vmem>>, %arg15: memref<1x8x32xf32, #tpu.memory_space<vmem>>, %arg16: memref<8x32xf32, #tpu.memory_space<vmem>>, %arg17: memref<8x32xf32, #tpu.memory_space<vmem>>) attributes {dimension_semantics = [#tpu.dimension_semantics<parallel>, #tpu.dimension_semantics<arbitrary>], iteration_bounds = array<i64: 2, 4>, scalar_prefetch = 0 : i64, scratch_operands = 2 : i64, tpu.core_type = #tpu.core_type<tc>, window_params = [{transform_indices = @transform_0, window_bounds = array<i64: 1, 8, 32>}, {pipeline_mode = #tpu.pipeline_mode<synchronous>, transform_indices = @transform_1, window_bounds = array<i64: 1, 32>}, {pipeline_mode = #tpu.pipeline_mode<synchronous>, transform_indices = @transform_2, window_bounds = array<i64: 1, 32>}, {transform_indices = @transform_3, window_bounds = array<i64: 1, 32, 24>}, {transform_indices = @transform_4, window_bounds = array<i64: 1, 1, 24>}, {transform_indices = @transform_5, window_bounds = array<i64: 1, 8, 32>}, {pipeline_mode = #tpu.pipeline_mode<synchronous>, transform_indices = @transform_6, window_bounds = array<i64: 1, 32>}, {pipeline_mode = #tpu.pipeline_mode<synchronous>, transform_indices = @transform_7, window_bounds = array<i64: 1, 32>}, {pipeline_mode = #tpu.pipeline_mode<synchronous>, transform_indices = @transform_8, window_bounds = array<i64: 1, 32>}, {pipeline_mode = #tpu.pipeline_mode<synchronous>, transform_indices = @transform_9, window_bounds = array<i64: 32, 128>}, {pipeline_mode = #tpu.pipeline_mode<synchronous>, transform_indices = @transform_10, window_bounds = array<i64: 1, 128>}, {pipeline_mode = #tpu.pipeline_mode<synchronous>, transform_indices = @transform_11, window_bounds = array<i64: 128, 32>}, {pipeline_mode = #tpu.pipeline_mode<synchronous>, transform_indices = @transform_12, window_bounds = array<i64: 1, 32>}, {transform_indices = @transform_13, window_bounds = array<i64: 1, 8, 32>}]} {
    %c0_i32 = arith.constant 0 : i32
    %0 = arith.cmpi eq, %arg1, %c0_i32 : i32
    %1 = arith.extui %0 : i1 to i32
    %c0_i32_0 = arith.constant 0 : i32
    %2 = arith.cmpi ne, %1, %c0_i32_0 : i32
    scf.if %2 {
      %c0_22 = arith.constant 0 : index
      %c0_23 = arith.constant 0 : index
      %c0_24 = arith.constant 0 : index
      %37 = vector.load %arg2[%c0_22, %c0_23, %c0_24] : memref<1x8x32xf32, #tpu.memory_space<vmem>>, vector<1x8x32xf32>
      %38 = vector.shape_cast %37 : vector<1x8x32xf32> to vector<8x32xf32>
      %cst_25 = arith.constant dense<0.000000e+00> : vector<8xf32>
      %39 = vector.multi_reduction <add>, %38, %cst_25 [1] : vector<8x32xf32> to vector<8xf32>
      %40 = vector.shape_cast %39 : vector<8xf32> to vector<8x1xf32>
      %cst_26 = arith.constant 3.200000e+01 : f32
      %41 = vector.broadcast %cst_26 : f32 to vector<8x1xf32>
      %42 = arith.divf %40, %41 : vector<8x1xf32>
      %43 = vector.broadcast %42 : vector<8x1xf32> to vector<8x32xf32>
      %44 = arith.subf %38, %43 : vector<8x32xf32>
      %45 = arith.mulf %44, %44 : vector<8x32xf32>
      %cst_27 = arith.constant dense<0.000000e+00> : vector<8xf32>
      %46 = vector.multi_reduction <add>, %45, %cst_27 [1] : vector<8x32xf32> to vector<8xf32>
      %47 = vector.shape_cast %46 : vector<8xf32> to vector<8x1xf32>
      %cst_28 = arith.constant 3.200000e+01 : f32
      %48 = vector.broadcast %cst_28 : f32 to vector<8x1xf32>
      %49 = arith.divf %47, %48 : vector<8x1xf32>
      %cst_29 = arith.constant 9.99999997E-7 : f32
      %50 = vector.broadcast %cst_29 : f32 to vector<8x1xf32>
      %51 = arith.addf %49, %50 : vector<8x1xf32>
      %52 = math.rsqrt %51 : vector<8x1xf32>
      %53 = vector.broadcast %52 : vector<8x1xf32> to vector<8x32xf32>
      %54 = arith.mulf %44, %53 : vector<8x32xf32>
      %c0_30 = arith.constant 0 : index
      %c0_31 = arith.constant 0 : index
      %55 = vector.load %arg3[%c0_30, %c0_31] : memref<1x32xf32, #tpu.memory_space<vmem>>, vector<1x32xf32>
      %56 = vector.broadcast %55 : vector<1x32xf32> to vector<8x32xf32>
      %57 = arith.mulf %54, %56 : vector<8x32xf32>
      %c0_32 = arith.constant 0 : index
      %c0_33 = arith.constant 0 : index
      %58 = vector.load %arg4[%c0_32, %c0_33] : memref<1x32xf32, #tpu.memory_space<vmem>>, vector<1x32xf32>
      %59 = vector.broadcast %58 : vector<1x32xf32> to vector<8x32xf32>
      %60 = arith.addf %57, %59 : vector<8x32xf32>
      %c0_34 = arith.constant 0 : index
      %c0_35 = arith.constant 0 : index
      %61 = vector.load %arg16[%c0_34, %c0_35] : memref<8x32xf32, #tpu.memory_space<vmem>>, vector<8x32xf32>
      tpu.vector_store %arg16[%c0_34, %c0_35], %60 {strides = array<i32>} : memref<8x32xf32, #tpu.memory_space<vmem>>, vector<8x32xf32>,
      %cst_36 = arith.constant 0.000000e+00 : f32
      %62 = vector.broadcast %cst_36 : f32 to vector<8x32xf32>
      %c0_37 = arith.constant 0 : index
      %c0_38 = arith.constant 0 : index
      %63 = vector.load %arg17[%c0_37, %c0_38] : memref<8x32xf32, #tpu.memory_space<vmem>>, vector<8x32xf32>
      tpu.vector_store %arg17[%c0_37, %c0_38], %62 {strides = array<i32>} : memref<8x32xf32, #tpu.memory_space<vmem>>, vector<8x32xf32>,
    } else {
    }
    %c0 = arith.constant 0 : index
    %c0_1 = arith.constant 0 : index
    %3 = vector.load %arg16[%c0, %c0_1] : memref<8x32xf32, #tpu.memory_space<vmem>>, vector<8x32xf32>
    %c0_2 = arith.constant 0 : index
    %c0_3 = arith.constant 0 : index
    %c0_4 = arith.constant 0 : index
    %4 = vector.load %arg5[%c0_2, %c0_3, %c0_4] : memref<1x32x24xf32, #tpu.memory_space<vmem>>, vector<1x32x24xf32>
    %5 = vector.shape_cast %4 : vector<1x32x24xf32> to vector<32x24xf32>
    %cst = arith.constant dense<0.000000e+00> : vector<8x24xf32>
    %6 = tpu.matmul %3, %5, %cst {dimension_numbers = #tpu.dot_dimension_numbers<[1], [0], [0], [1], [0, 0, 1, 1], [], []>} : vector<8x32xf32>, vector<32x24xf32>, vector<8x24xf32> -> vector<8x24xf32>
    %c0_5 = arith.constant 0 : index
    %c0_6 = arith.constant 0 : index
    %c0_7 = arith.constant 0 : index
    %7 = vector.load %arg6[%c0_5, %c0_6, %c0_7] : memref<1x1x24xf32, #tpu.memory_space<vmem>>, vector<1x1x24xf32>
    %8 = vector.shape_cast %7 : vector<1x1x24xf32> to vector<1x24xf32>
    %9 = vector.broadcast %8 : vector<1x24xf32> to vector<8x24xf32>
    %10 = arith.addf %6, %9 : vector<8x24xf32>
    %11 = vector.extract_strided_slice %10 {offsets = [0, 0], sizes = [8, 8], strides = [1, 1]} : vector<8x24xf32> to vector<8x8xf32>
    %cst_8 = arith.constant 0.353553385 : f32
    %12 = vector.broadcast %cst_8 : f32 to vector<8x8xf32>
    %13 = arith.mulf %11, %12 : vector<8x8xf32>
    %14 = vector.extract_strided_slice %10 {offsets = [0, 8], sizes = [8, 8], strides = [1, 1]} : vector<8x24xf32> to vector<8x8xf32>
    %15 = vector.extract_strided_slice %10 {offsets = [0, 16], sizes = [8, 8], strides = [1, 1]} : vector<8x24xf32> to vector<8x8xf32>
    %cst_9 = arith.constant dense<0.000000e+00> : vector<8x8xf32>
    %16 = tpu.matmul %13, %14, %cst_9 {dimension_numbers = #tpu.dot_dimension_numbers<[1], [1], [0], [0], [0, 0, 1, 0], [], []>} : vector<8x8xf32>, vector<8x8xf32>, vector<8x8xf32> -> vector<8x8xf32>
    %cst_10 = arith.constant dense<0xFF800000> : vector<8xf32>
    %17 = vector.multi_reduction <maximumf>, %16, %cst_10 [1] : vector<8x8xf32> to vector<8xf32>
    %18 = vector.shape_cast %17 : vector<8xf32> to vector<8x1xf32>
    %19 = vector.broadcast %18 : vector<8x1xf32> to vector<8x8xf32>
    %20 = arith.subf %16, %19 : vector<8x8xf32>
    %21 = math.exp %20 : vector<8x8xf32>
    %cst_11 = arith.constant dense<0.000000e+00> : vector<8xf32>
    %22 = vector.multi_reduction <add>, %21, %cst_11 [1] : vector<8x8xf32> to vector<8xf32>
    %23 = vector.shape_cast %22 : vector<8xf32> to vector<8x1xf32>
    %24 = tpu.reciprocal %23 : vector<8x1xf32> -> vector<8x1xf32>
    %25 = vector.broadcast %24 : vector<8x1xf32> to vector<8x8xf32>
    %26 = arith.mulf %21, %25 : vector<8x8xf32>
    %cst_12 = arith.constant dense<0.000000e+00> : vector<8x8xf32>
    %27 = tpu.matmul %26, %15, %cst_12 {dimension_numbers = #tpu.dot_dimension_numbers<[1], [0], [0], [1], [0, 0, 1, 1], [], []>} : vector<8x8xf32>, vector<8x8xf32>, vector<8x8xf32> -> vector<8x8xf32>
    %c0_13 = arith.constant 0 : index
    %c0_14 = arith.constant 0 : index
    %28 = vector.load %arg17[%c0_13, %c0_14] : memref<8x32xf32, #tpu.memory_space<vmem>>, vector<8x32xf32>
    %c0_15 = arith.constant 0 : index
    %c0_16 = arith.constant 0 : index
    %c0_17 = arith.constant 0 : index
    %29 = vector.load %arg7[%c0_15, %c0_16, %c0_17] : memref<1x8x32xf32, #tpu.memory_space<vmem>>, vector<1x8x32xf32>
    %30 = vector.shape_cast %29 : vector<1x8x32xf32> to vector<8x32xf32>
    %cst_18 = arith.constant dense<0.000000e+00> : vector<8x32xf32>
    %31 = tpu.matmul %27, %30, %cst_18 {dimension_numbers = #tpu.dot_dimension_numbers<[1], [0], [0], [1], [0, 0, 1, 1], [], []>} : vector<8x8xf32>, vector<8x32xf32>, vector<8x32xf32> -> vector<8x32xf32>
    %32 = arith.addf %28, %31 : vector<8x32xf32>
    %c0_19 = arith.constant 0 : index
    %c0_20 = arith.constant 0 : index
    %33 = vector.load %arg17[%c0_19, %c0_20] : memref<8x32xf32, #tpu.memory_space<vmem>>, vector<8x32xf32>
    tpu.vector_store %arg17[%c0_19, %c0_20], %32 {strides = array<i32>} : memref<8x32xf32, #tpu.memory_space<vmem>>, vector<8x32xf32>,
    %c3_i32 = arith.constant 3 : i32
    %34 = arith.cmpi eq, %arg1, %c3_i32 : i32
    %35 = arith.extui %34 : i1 to i32
    %c0_i32_21 = arith.constant 0 : i32
    %36 = arith.cmpi ne, %35, %c0_i32_21 : i32
    scf.if %36 {
      %c0_22 = arith.constant 0 : index
      %c0_23 = arith.constant 0 : index
      %c0_24 = arith.constant 0 : index
      %37 = vector.load %arg2[%c0_22, %c0_23, %c0_24] : memref<1x8x32xf32, #tpu.memory_space<vmem>>, vector<1x8x32xf32>
      %38 = vector.shape_cast %37 : vector<1x8x32xf32> to vector<8x32xf32>
      %c0_25 = arith.constant 0 : index
      %c0_26 = arith.constant 0 : index
      %39 = vector.load %arg17[%c0_25, %c0_26] : memref<8x32xf32, #tpu.memory_space<vmem>>, vector<8x32xf32>
      %c0_27 = arith.constant 0 : index
      %c0_28 = arith.constant 0 : index
      %40 = vector.load %arg8[%c0_27, %c0_28] : memref<1x32xf32, #tpu.memory_space<vmem>>, vector<1x32xf32>
      %41 = vector.broadcast %40 : vector<1x32xf32> to vector<8x32xf32>
      %42 = arith.addf %39, %41 : vector<8x32xf32>
      %43 = arith.addf %42, %38 : vector<8x32xf32>
      %cst_29 = arith.constant dense<0.000000e+00> : vector<8xf32>
      %44 = vector.multi_reduction <add>, %43, %cst_29 [1] : vector<8x32xf32> to vector<8xf32>
      %45 = vector.shape_cast %44 : vector<8xf32> to vector<8x1xf32>
      %cst_30 = arith.constant 3.200000e+01 : f32
      %46 = vector.broadcast %cst_30 : f32 to vector<8x1xf32>
      %47 = arith.divf %45, %46 : vector<8x1xf32>
      %48 = vector.broadcast %47 : vector<8x1xf32> to vector<8x32xf32>
      %49 = arith.subf %43, %48 : vector<8x32xf32>
      %50 = arith.mulf %49, %49 : vector<8x32xf32>
      %cst_31 = arith.constant dense<0.000000e+00> : vector<8xf32>
      %51 = vector.multi_reduction <add>, %50, %cst_31 [1] : vector<8x32xf32> to vector<8xf32>
      %52 = vector.shape_cast %51 : vector<8xf32> to vector<8x1xf32>
      %cst_32 = arith.constant 3.200000e+01 : f32
      %53 = vector.broadcast %cst_32 : f32 to vector<8x1xf32>
      %54 = arith.divf %52, %53 : vector<8x1xf32>
      %cst_33 = arith.constant 9.99999997E-7 : f32
      %55 = vector.broadcast %cst_33 : f32 to vector<8x1xf32>
      %56 = arith.addf %54, %55 : vector<8x1xf32>
      %57 = math.rsqrt %56 : vector<8x1xf32>
      %58 = vector.broadcast %57 : vector<8x1xf32> to vector<8x32xf32>
      %59 = arith.mulf %49, %58 : vector<8x32xf32>
      %c0_34 = arith.constant 0 : index
      %c0_35 = arith.constant 0 : index
      %60 = vector.load %arg9[%c0_34, %c0_35] : memref<1x32xf32, #tpu.memory_space<vmem>>, vector<1x32xf32>
      %61 = vector.broadcast %60 : vector<1x32xf32> to vector<8x32xf32>
      %62 = arith.mulf %59, %61 : vector<8x32xf32>
      %c0_36 = arith.constant 0 : index
      %c0_37 = arith.constant 0 : index
      %63 = vector.load %arg10[%c0_36, %c0_37] : memref<1x32xf32, #tpu.memory_space<vmem>>, vector<1x32xf32>
      %64 = vector.broadcast %63 : vector<1x32xf32> to vector<8x32xf32>
      %65 = arith.addf %62, %64 : vector<8x32xf32>
      %c0_38 = arith.constant 0 : index
      %c0_39 = arith.constant 0 : index
      %66 = vector.load %arg11[%c0_38, %c0_39] : memref<32x128xf32, #tpu.memory_space<vmem>>, vector<32x128xf32>
      %cst_40 = arith.constant dense<0.000000e+00> : vector<8x128xf32>
      %67 = tpu.matmul %65, %66, %cst_40 {dimension_numbers = #tpu.dot_dimension_numbers<[1], [0], [0], [1], [0, 0, 1, 1], [], []>} : vector<8x32xf32>, vector<32x128xf32>, vector<8x128xf32> -> vector<8x128xf32>
      %c0_41 = arith.constant 0 : index
      %c0_42 = arith.constant 0 : index
      %68 = vector.load %arg12[%c0_41, %c0_42] : memref<1x128xf32, #tpu.memory_space<vmem>>, vector<1x128xf32>
      %69 = vector.broadcast %68 : vector<1x128xf32> to vector<8x128xf32>
      %70 = arith.addf %67, %69 : vector<8x128xf32>
      %cst_43 = arith.constant 5.000000e-01 : f32
      %71 = vector.broadcast %cst_43 : f32 to vector<8x128xf32>
      %72 = arith.mulf %71, %70 : vector<8x128xf32>
      %73 = arith.mulf %70, %70 : vector<8x128xf32>
      %74 = arith.mulf %73, %70 : vector<8x128xf32>
      %cst_44 = arith.constant 4.471500e-02 : f32
      %75 = vector.broadcast %cst_44 : f32 to vector<8x128xf32>
      %76 = arith.mulf %75, %74 : vector<8x128xf32>
      %77 = arith.addf %70, %76 : vector<8x128xf32>
      %cst_45 = arith.constant 0.797884583 : f32
      %78 = vector.broadcast %cst_45 : f32 to vector<8x128xf32>
      %79 = arith.mulf %78, %77 : vector<8x128xf32>
      %80 = math.tanh %79 : vector<8x128xf32>
      %cst_46 = arith.constant 1.000000e+00 : f32
      %81 = vector.broadcast %cst_46 : f32 to vector<8x128xf32>
      %82 = arith.addf %81, %80 : vector<8x128xf32>
      %83 = arith.mulf %72, %82 : vector<8x128xf32>
      %c0_47 = arith.constant 0 : index
      %c0_48 = arith.constant 0 : index
      %84 = vector.load %arg13[%c0_47, %c0_48] : memref<128x32xf32, #tpu.memory_space<vmem>>, vector<128x32xf32>
      %cst_49 = arith.constant dense<0.000000e+00> : vector<8x32xf32>
      %85 = tpu.matmul %83, %84, %cst_49 {dimension_numbers = #tpu.dot_dimension_numbers<[1], [0], [0], [1], [0, 0, 1, 1], [], []>} : vector<8x128xf32>, vector<128x32xf32>, vector<8x32xf32> -> vector<8x32xf32>
      %c0_50 = arith.constant 0 : index
      %c0_51 = arith.constant 0 : index
      %86 = vector.load %arg14[%c0_50, %c0_51] : memref<1x32xf32, #tpu.memory_space<vmem>>, vector<1x32xf32>
      %87 = vector.broadcast %86 : vector<1x32xf32> to vector<8x32xf32>
      %88 = arith.addf %85, %87 : vector<8x32xf32>
      %89 = arith.addf %88, %43 : vector<8x32xf32>
      %c0_52 = arith.constant 0 : index
      %c0_53 = arith.constant 0 : index
      %c0_54 = arith.constant 0 : index
      %90 = vector.load %arg15[%c0_52, %c0_53, %c0_54] : memref<1x8x32xf32, #tpu.memory_space<vmem>>, vector<1x8x32xf32>
      %91 = vector.shape_cast %90 : vector<1x8x32xf32> to vector<8x32xf32>
      %92 = vector.shape_cast %89 : vector<8x32xf32> to vector<1x8x32xf32>
      tpu.vector_store %arg15[%c0_52, %c0_53, %c0_54], %92 {strides = array<i32>} : memref<1x8x32xf32, #tpu.memory_space<vmem>>, vector<1x8x32xf32>,
    } else {
    }
    return
  }
  func.func @transform_0(%arg0: i32, %arg1: i32) -> (i32, i32, i32) {
    %c0_i32 = arith.constant 0 : i32
    %c0_i32_0 = arith.constant 0 : i32
    %c0_i32_1 = arith.constant 0 : i32
    return %arg0, %c0_i32, %c0_i32_0 : i32, i32, i32
  }
  func.func @transform_1(%arg0: i32, %arg1: i32) -> (i32, i32) {
    %c0_i32 = arith.constant 0 : i32
    %c0_i32_0 = arith.constant 0 : i32
    %c0_i32_1 = arith.constant 0 : i32
    return %c0_i32, %c0_i32_0 : i32, i32
  }
  func.func @transform_2(%arg0: i32, %arg1: i32) -> (i32, i32) {
    %c0_i32 = arith.constant 0 : i32
    %c0_i32_0 = arith.constant 0 : i32
    %c0_i32_1 = arith.constant 0 : i32
    return %c0_i32, %c0_i32_0 : i32, i32
  }
  func.func @transform_3(%arg0: i32, %arg1: i32) -> (i32, i32, i32) {
    %c0_i32 = arith.constant 0 : i32
    %c0_i32_0 = arith.constant 0 : i32
    %c0_i32_1 = arith.constant 0 : i32
    return %arg1, %c0_i32, %c0_i32_0 : i32, i32, i32
  }
  func.func @transform_4(%arg0: i32, %arg1: i32) -> (i32, i32, i32) {
    %c0_i32 = arith.constant 0 : i32
    %c0_i32_0 = arith.constant 0 : i32
    %c0_i32_1 = arith.constant 0 : i32
    return %arg1, %c0_i32, %c0_i32_0 : i32, i32, i32
  }
  func.func @transform_5(%arg0: i32, %arg1: i32) -> (i32, i32, i32) {
    %c0_i32 = arith.constant 0 : i32
    %c0_i32_0 = arith.constant 0 : i32
    %c0_i32_1 = arith.constant 0 : i32
    return %arg1, %c0_i32, %c0_i32_0 : i32, i32, i32
  }
  func.func @transform_6(%arg0: i32, %arg1: i32) -> (i32, i32) {
    %c0_i32 = arith.constant 0 : i32
    %c0_i32_0 = arith.constant 0 : i32
    %c0_i32_1 = arith.constant 0 : i32
    return %c0_i32, %c0_i32_0 : i32, i32
  }
  func.func @transform_7(%arg0: i32, %arg1: i32) -> (i32, i32) {
    %c0_i32 = arith.constant 0 : i32
    %c0_i32_0 = arith.constant 0 : i32
    %c0_i32_1 = arith.constant 0 : i32
    return %c0_i32, %c0_i32_0 : i32, i32
  }
  func.func @transform_8(%arg0: i32, %arg1: i32) -> (i32, i32) {
    %c0_i32 = arith.constant 0 : i32
    %c0_i32_0 = arith.constant 0 : i32
    %c0_i32_1 = arith.constant 0 : i32
    return %c0_i32, %c0_i32_0 : i32, i32
  }
  func.func @transform_9(%arg0: i32, %arg1: i32) -> (i32, i32) {
    %c0_i32 = arith.constant 0 : i32
    %c0_i32_0 = arith.constant 0 : i32
    %c0_i32_1 = arith.constant 0 : i32
    return %c0_i32, %c0_i32_0 : i32, i32
  }
  func.func @transform_10(%arg0: i32, %arg1: i32) -> (i32, i32) {
    %c0_i32 = arith.constant 0 : i32
    %c0_i32_0 = arith.constant 0 : i32
    %c0_i32_1 = arith.constant 0 : i32
    return %c0_i32, %c0_i32_0 : i32, i32
  }
  func.func @transform_11(%arg0: i32, %arg1: i32) -> (i32, i32) {
    %c0_i32 = arith.constant 0 : i32
    %c0_i32_0 = arith.constant 0 : i32
    %c0_i32_1 = arith.constant 0 : i32
    return %c0_i32, %c0_i32_0 : i32, i32
  }
  func.func @transform_12(%arg0: i32, %arg1: i32) -> (i32, i32) {
    %c0_i32 = arith.constant 0 : i32
    %c0_i32_0 = arith.constant 0 : i32
    %c0_i32_1 = arith.constant 0 : i32
    return %c0_i32, %c0_i32_0 : i32, i32
  }
  func.func @transform_13(%arg0: i32, %arg1: i32) -> (i32, i32, i32) {
    %c0_i32 = arith.constant 0 : i32
    %c0_i32_0 = arith.constant 0 : i32
    %c0_i32_1 = arith.constant 0 : i32
    return %arg0, %c0_i32, %c0_i32_0 : i32, i32, i32
  }
}

</mosaic_0001>

<bundles_post_ra>
// kernel: tpu_custom_call.1
= control target key start
LH: loop header
LB: loop body
LE: loop exit
PB: predicated region body
PF: predicated region fallthrough
CT: control target
= control target key end

     0   :  { %s1907_s0 = inlined_call_operand.vmem [shape: f32[2,8,32], index: 0, kind: input, shape index: {}]   ;;  %s1908_s1 = inlined_call_operand.vmem [shape: f32[1,32], index: 1, kind: input, shape index: {}]   ;;  %s1909_s2 = inlined_call_operand.vmem [shape: f32[1,32], index: 2, kind: input, shape index: {}]   ;;  %s1910_s3 = inlined_call_operand.vmem [shape: f32[4,32,24], index: 3, kind: input, shape index: {}]   ;;  %s1911_s4 = inlined_call_operand.vmem [shape: f32[4,1,24], index: 4, kind: input, shape index: {}]   ;;  %s1912_s5 = inlined_call_operand.vmem [shape: f32[4,8,32], index: 5, kind: input, shape index: {}]   ;;  %s1913_s6 = inlined_call_operand.vmem [shape: f32[1,32], index: 6, kind: input, shape index: {}]   ;;  %s1914_s7 = inlined_call_operand.vmem [shape: f32[1,32], index: 7, kind: input, shape index: {}]   ;;  %s1915_s8 = inlined_call_operand.vmem [shape: f32[1,32], index: 8, kind: input, shape index: {}]   ;;  %s1916_s9 = inlined_call_operand.vmem [shape: f32[32,128], index: 9, kind: input, shape index: {}]   ;;  %s1917_s10 = inlined_call_operand.vmem [shape: f32[1,128], index: 10, kind: input, shape index: {}]   ;;  %s1918_s11 = inlined_call_operand.vmem [shape: f32[128,32], index: 11, kind: input, shape index: {}]   ;;  %s1919_s12 = inlined_call_operand.vmem [shape: f32[1,32], index: 12, kind: input, shape index: {}]   ;;  %s1920_s13 = inlined_call_operand.hbm [shape: f32[2,8,32], index: 13, kind: output, shape index: {}]  }
   0x1   :  { %1935 = sst [smem:[#allocation19_spill]] %s1919_s12 }
   0x2   :  { %1936 = sst [smem:[#allocation20_spill]] %s1920_s13 }
   0x3   :  { %18 = vsyncpa [#allocation5], 0 }
   0x4   :  { %20 = vsyncpa [#allocation5 + $0x1], 0  ;;  %s1613_s25 = smov 0   ;;  %s1615_s26 = smov 0  }
   0x5   :  { %s1617_s27 = smov 0   ;;  %s1619_s28 = smov 0  }
   0x6   :  { %s1621_s29 = smov 0   ;;  %s1623_s30 = smov 0  }
   0x7   :  { %s1625_s14 = smov 0   ;;  %s1627_s15 = smov 0  }
   0x8 LB: > { %1937 = sst [smem:[#allocation7_spill]] %s1505_s25  ;;  %s1217_s16 = sadd.s32 4294967295, %s1533_s15   ;;  %s1533_s15 = sphi %s1627_s15, %s26_s15   ;;  %s1529_s14 = sphi %s1625_s14, %s1966_s14   ;;  %s1525_s30 = sphi %s1623_s30, %s1965_s30   ;;  %s1521_s29 = sphi %s1621_s29, %s1964_s29   ;;  %s1517_s28 = sphi %s1619_s28, %s1963_s28   ;;  %s1513_s27 = sphi %s1617_s27, %s1962_s27   ;;  %s1509_s26 = sphi %s1615_s26, %s1961_s26   ;;  %s1505_s25 = sphi %s1613_s25, %s1960_s25  }
   0x9   : > { %1938 = sst [smem:[#allocation8_spill]] %s1509_s26  ;;  %s1218_s17 = sadd.s32 4294967294, %s1533_s15  }
   0xa   : > { %1939 = sst [smem:[#allocation9_spill]] %s1513_s27  ;;  %s35_s18 = sadd.s32 1, %s1525_s30 }
   0xb   : > { %1940 = sst [smem:[#allocation10_spill]] %s1521_s29  ;;  %p36_p0 = scmp.ge.s32.totalorder %s35_s18, 4 }
   0xc   : > { %1941 = sst [smem:[#allocation11_spill]] %s1525_s30  ;;  %s38_s19 = sadd.s32 1, %s1529_s14 }
   0xd   : > { %1942 = sst [smem:[#allocation12_spill]] %s1529_s14  ;;  %p348_p1 = scmp.ne.s32.totalorder %s1513_s27, %s1509_s26 }
   0xe   : > { %1943 = sst [smem:[#allocation13_spill]] %s1533_s15  ;;  %p349_p2 = scmp.eq.s32.totalorder %s1217_s16, 7 }
   0xf   : > { %s1968_s18 = smov (%p36_p0, %s35_s18), 0  ;;  %s1970_s19 = smov (!%p36_p0, %s38_s19), %s1529_s14 }
  0x10   : > { %1944 = sst [smem:[#allocation14_spill]] %s1968_s18  ;;  %p1662_p3 = por %p349_p2, %p348_p1 }
  0x11   : > { %p354_p4 = scmp.ne.s32.totalorder %s1509_s26, %s1505_s25  ;;  %p40_p5 = scmp.ge.s32.totalorder %s1970_s19, 2 }
  0x12   : > { %s1945_s20 = scalar_select %p1662_p3, 1, 0 }
  0x13   : > { %p355_p6 = scmp.eq.s32.totalorder %s1218_s17, 7  ;;  %p1221_p7 = scmp.ge.s32.totalorder %s1533_s15, 1 }
  0x14   : > { %1946 = sst [smem:[#allocation15_spill]] %s1945_s20  ;;  %p428_p8 = scmp.lt.s32.totalorder %s1533_s15, 9 }
  0x15   : > { %s1972_s19 = smov (%p40_p5, %s1970_s19), 0  ;;  %p1672_p9 = por %p355_p6, %p354_p4 }
  0x16   : > { %1947 = sst [smem:[#allocation16_spill]] %s1972_s19  ;;  %p429_p10 = pnand %p1221_p7, %p428_p8 }
  0x17   : > { %s1948_s21 = scalar_select %p1672_p9, 1, 0 }
  0x18   : > { %s335_s22 = ssub.s32 %s1529_s14, %s1972_s19  ;;  %s338_s23 = sadd.s32 1, %s1513_s27 }
  0x19   : > { %1949 = sst [smem:[#allocation17_spill]] %s1948_s21  ;;  %p336_p11 = scmp.eq.s32.totalorder %s335_s22, 0 }
  0x1a   : > { %432 = sbr.rel (%p429_p10) target bundleno = 2329 (0x919), region = 72  ;;  %s1926_s16 = sand.u32 (!%p429_p10), 1, %s1509_s26  }
  0x1b   : > { %s1680_s24 = scalar_select %p336_p11, %s1513_s27, %s338_s23  }
  0x1c   : > { %p483_p12 = scmp.lt.s32.totalorder (!%p429_p10), %s1521_s29, 1  ;;  %s1686_s17 = sshll.u32 (!%p429_p10), %s1926_s16, 3 }
  0x1d   : > { %1950 = sst [smem:[#allocation18_spill]] %s1680_s24  ;;  %p487_p13 = scmp.lt.s32.totalorder (!%p429_p10), %s1517_s28, 3 }
  0x1e   : > { %s482_s12 = scalar_lea.vmem (!%p429_p10), [#allocation4], %s1686_s17  ;;  %p1227_p0 = scmp.ne.s32.totalorder (!%p429_p10), %s1517_s28, 0 }
  0x1f   : > { %s484_s18 = scalar_select %p483_p12, %s1521_s29, 1 }
  0x20   : > { %s1691_s19 = scalar_select %p487_p13, %s1517_s28, 3 }
  0x21   : > { %s1223_s22 = sshll.u32 %s484_s18, 3  ;;  %502 = sbr.rel (%p1227_p0) target bundleno = 348 (0x15c), region = 76 }
  0x22   : > { %s1696_s30 = scalar_lea.vmem %s1907_s0, %s1223_s22  ;;  %s1247_s24 = sshll.u32 %s1691_s19, 5 }
  0x23   : > { %s1702_s16 = scalar_lea.vmem %s1910_s3, %s1247_s24  ;;  %s494_s13 = scalar_lea.vmem %s1911_s4, %s1691_s19 }
  0x24   : > { %s1226_s20 = sshll.u32 %s1691_s19, 3 }
  0x25   : > { %s1712_s18 = scalar_lea.vmem %s1912_s5, %s1226_s20 }
  0x26   : > { %v503_v0 = vld [vmem:[%s1696_s30] sm:$0xff]  ;;  %vm504_vm0 = vcmask 261120   ;;  %v1535_v2 = vmov 0.0  }
  0x27   : > { %v505_v1 = vsel %vm504_vm0, %v503_v0, 0.0  ;;  %536 = vst.msk [vmem:[#allocation3] sm:$0xff] %vm504_vm0, %v1535_v2  ;;  %v1228_v12 = vld [vmem:[%s1908_s1] ss:$0 sm:$0xff] }
  0x28   : > { %506 = vadd.xlane.f32.xlu0 %v505_v1  ;;  %v1229_v14 = vld [vmem:[%s1909_s2] ss:$0 sm:$0xff] }
  0xb1   : > { %v507_v3 = vpop.xlane.xlu0 %506 }
  0xb2   : > { %v509_v4 = vmul.f32 0.03125, %v507_v3 }
  0xb4   : > { %v510_v5 = vsub.f32 %v503_v0, %v509_v4 }
  0xb6   : > { %v511_v6 = vmul.f32 %v510_v5, %v510_v5 }
  0xb8   : > { %v512_v7 = vsel %vm504_vm0, %v511_v6, 0.0 }
  0xb9   : > { %513 = vadd.xlane.f32.xlu0 %v512_v7 }
 0x142   : > { %v514_v8 = vpop.xlane.xlu0 %513 }
 0x143   : > { %v515_v9 = vmul.f32 0.03125, %v514_v8 }
 0x145   : > { %v516_v10 = vadd.f32 1e-06, %v515_v9 }
 0x147   : > { %1431 = vrsqrt.f32 %v516_v10 }
 0x154   : > { %v1432_v11 = vpop.eup %1431 }
 0x155   : > { %v518_v13 = vmul.f32 %v1432_v11, %v510_v5 }
 0x157   : > { %v526_v15 = vmul.f32 %v1228_v12, %v518_v13 }
 0x159   : > { %v534_v16 = vadd.f32 %v1229_v14, %v526_v15 }
 0x15b   : > { %535 = vst.msk [vmem:[#allocation2] sm:$0xff] %vm504_vm0, %v534_v16 }
 0x15c PF: > { %v541_v17 = vld [vmem:[%s1702_s16 + $0x18] sm:$0xff]  ;;  %v1536_v18 = vmov 0.0   ;;  %v540_v19 = vld [vmem:[%s1702_s16 + $0x10] sm:$0xff]  ;;  %vm1537_vm1 = vmmov 0   ;;  %v539_v20 = vld [vmem:[%s1702_s16 + $0x8] sm:$0xff]  ;;  %vm549_vm2 = vcmask 261120  }
 0x15d   : > { %1281 = vmatprep.subr.mxu0 %v1536_v18  ;;  %1289 = vmatprep.mubr.msk.f32.mxu0 %vm1537_vm1, %v1536_v18  ;;  %v538_v21 = vld [vmem:[%s1702_s16] sm:$0xff]  ;;  %s1538_s20 = smov 120   ;;  %vm627_vm3 = vcmask 64512   ;;  %v790_v44 = vld [vmem:[#allocation3] sm:$0xff]  ;;  %p1236_p1 = scmp.ne.s32.totalorder %s1517_s28, 3 }
 0x15e   : > { %1282 = vmatpush3.msra.mxu0 %v541_v17  ;;  %1292 = vmatprep.subr.mxu1 %v1536_v18  ;;  %v1230_v23 = vld [vmem:[%s494_s13] ss:$0 sm:$0xff]  ;;  %s1539_s13 = smov 112  }
 0x15f   : > { %1283 = vmatprep.subr.mxu0 %v1536_v18  ;;  %1294 = vmatprep.mubr.msk.f32.mxu1 %vm1537_vm1, %v1536_v18  ;;  %v791_v37 = vld [vmem:[%s1712_s18] sm:$0xff] }
 0x160   : > { %1284 = vmatpush3.msra.mxu0 %v540_v19 }
 0x161   : > { %1285 = vmatprep.subr.mxu0 %v1536_v18 }
 0x162   : > { %1286 = vmatpush3.msra.mxu0 %v539_v20  ;;  %v537_v22 = vld [vmem:[#allocation2] sm:$0xff] }
 0x163   : > { %1287 = vmatprep.subr.mxu0 %v1536_v18 }
 0x164   : > { %1288 = vmatpush3.msra.mxu0 %v538_v21 }
 0x165   : > { %1290 = vmatmul.mubr.msk.f32.vlgmr.msra.gmra.mxu0 %vm549_vm2, %v537_v22  ;;  %1302 = vmatprep.subr.mxu0 %v1536_v18 }
 0x166   : > { %1304 = vmatprep.mubr.msk.f32.mxu0 %vm1537_vm1, %v1536_v18  ;;  %1303 = vmatpush3.msra.mxu0 %v791_v37 }
 0x225   : > { %v619_v24 = vpop.f32.mrf.mxu0 }
 0x226   : > { %v620_v25 = vadd.f32 %v1230_v23, %v619_v24 }
 0x227   : > { %v1291_v26 = vpop.f32.mrf.mxu0 }
 0x228   : > { %625 = vrot.lane.b32.xlu0 %v620_v25, %s1538_s20  ;;  %v623_v28 = vmul.f32 0.35355338, %v620_v25 }
 0x29a   : > { %v626_v27 = vpop.permute.xlu0 %625 }
 0x29b   : > { %1293 = vmatpush3.xpose.msk.msra.mxu1 %vm627_vm3, %v626_v27 }
 0x29c   : > { %1297 = vmatprep.subr.mxu1 %v1536_v18 }
 0x29e   : > { %1295 = vmatmul.mubr.msk.f32.vlgmr.msra.gmra.mxu1 %vm627_vm3, %v623_v28 }
 0x29f   : > { %1299 = vmatprep.mubr.msk.f32.mxu1 %vm1537_vm1, %v1536_v18 }
 0x35e   : > { %v699_v29 = vpop.f32.mrf.mxu1 }
 0x35f   : > { %v703_v30 = vsel %vm627_vm3, %v699_v29, -inf }
 0x360   : > { %704 = vmax.xlane.f32.xlu0 %v703_v30  ;;  %v1296_v31 = vpop.f32.mrf.mxu1 }
 0x3e9   : > { %v705_v32 = vpop.xlane.xlu0 %704 }
 0x3ea   : > { %v706_v33 = vsub.f32 %v699_v29, %v705_v32 }
 0x3ec   : > { %v707_v34 = vmul.f32 1.442695, %v706_v33 }
 0x3ee   : > { %1433 = vpow2.f32 %v707_v34 }
 0x3fb   : > { %v1434_v35 = vpop.eup %1433 }
 0x3fc   : > { %v709_v36 = vsel %vm627_vm3, %v1434_v35, 0.0 }
 0x3fd   : > { %710 = vadd.xlane.f32.xlu1 %v709_v36 }
 0x40e   : > { %714 = vrot.lane.b32.xlu1 %v620_v25, %s1539_s13  ;;  %s1951_s13 = sld [smem:[#allocation19_spill]] (!%p1236_p1) }
 0x486   : > { %v711_v38 = vpop.xlane.xlu1 %710 }
 0x487   : > { %1435 = vrcp.f32 %v711_v38 }
 0x48a   : > { %v715_v39 = vpop.permute.xlu1 %714 }
 0x48b   : > { %1298 = vmatpush3.msra.mxu1 %v715_v39 }
 0x494   : > { %v1436_v40 = vpop.eup %1435 }
 0x495   : > { %v713_v41 = vmul.f32 %v1436_v40, %v1434_v35 }
 0x497   : > { %1300 = vmatmul.mubr.msk.f32.vlgmr.msra.gmra.mxu1 %vm627_vm3, %v713_v41 }
 0x557   : > { %v786_v42 = vpop.f32.mrf.mxu1 }
 0x558   : > { %1305 = vmatmul.mubr.msk.f32.vlgmr.msra.gmra.mxu0 %vm627_vm3, %v786_v42 }
 0x559   : > { %v1301_v43 = vpop.f32.mrf.mxu1 }
 0x617   : > { %870 = sbr.rel (%p1236_p1) target bundleno = 2304 (0x900), region = 80 }
 0x618   : > { %v861_v45 = vpop.f32.mrf.mxu0 }
 0x619   : > { %v865_v46 = vadd.f32 %v861_v45, %v790_v44 }
 0x61a   : > { %v1306_v47 = vpop.f32.mrf.mxu0 }
 0x61b   : > { %866 = vst.msk [vmem:[#allocation3] sm:$0xff] %vm549_vm2, %v865_v46 }
 0x61c   : > { %v871_v48 = vld [vmem:[%s1696_s30] sm:$0xff]  ;;  %v915_v59 = vld [vmem:[%s1916_s9 + $0x18] sm:$0xff]  ;;  %v1540_v60 = vmov 0.0   ;;  %v914_v61 = vld [vmem:[%s1916_s9 + $0x10] sm:$0xff]  ;;  %vm1541_vm4 = vmmov 0  }
 0x61d   : > { %v1237_v50 = vld [vmem:[%s1913_s6] ss:$0 sm:$0xff]  ;;  %1307 = vmatprep.subr.mxu0 %v1540_v60  ;;  %1315 = vmatprep.mubr.msk.f32.mxu0 %vm1541_vm4, %v1540_v60  ;;  %v913_v62 = vld [vmem:[%s1916_s9 + $0x8] sm:$0xff]  ;;  %v1020_v9 = vld [vmem:[%s1918_s11 + $0x78] sm:$0xff] }
 0x61e   : > { %1308 = vmatpush3.msra.mxu0 %v915_v59  ;;  %1318 = vmatprep.subr.mxu1 %v1540_v60  ;;  %v912_v63 = vld [vmem:[%s1916_s9] sm:$0xff]  ;;  %v1019_v10 = vld [vmem:[%s1918_s11 + $0x70] sm:$0xff]  ;;  %v1018_v11 = vld [vmem:[%s1918_s11 + $0x68] sm:$0xff] }
 0x61f   : > { %1309 = vmatprep.subr.mxu0 %v1540_v60  ;;  %1350 = vmatprep.mubr.msk.f32.mxu1 %vm1541_vm4, %v1540_v60  ;;  %v1238_v4 = vld [vmem:[%s1914_s7] ss:$0 sm:$0xff]  ;;  %v1016_v13 = vld [vmem:[%s1918_s11 + $0x58] sm:$0xff]  ;;  %v1015_v14 = vld [vmem:[%s1918_s11 + $0x50] sm:$0xff] }
 0x620   : > { %1310 = vmatpush3.msra.mxu0 %v914_v61  ;;  %v1239_v6 = vld [vmem:[%s1915_s8] ss:$0 sm:$0xff]  ;;  %1319 = vmatpush3.msra.mxu1 %v1020_v9  ;;  %v1014_v15 = vld [vmem:[%s1918_s11 + $0x48] sm:$0xff]  ;;  %v1012_v17 = vld [vmem:[%s1918_s11 + $0x38] sm:$0xff] }
 0x621   : > { %1311 = vmatprep.subr.mxu0 %v1540_v60  ;;  %1320 = vmatprep.subr.mxu1 %v1540_v60  ;;  %v1017_v12 = vld [vmem:[%s1918_s11 + $0x60] sm:$0xff]  ;;  %v1011_v18 = vld [vmem:[%s1918_s11 + $0x30] sm:$0xff]  ;;  %v1010_v19 = vld [vmem:[%s1918_s11 + $0x28] sm:$0xff] }
 0x622   : > { %v872_v49 = vld [vmem:[#allocation3] sm:$0xff]  ;;  %1312 = vmatpush3.msra.mxu0 %v913_v62  ;;  %1321 = vmatpush3.msra.mxu1 %v1019_v10  ;;  %v1013_v16 = vld [vmem:[%s1918_s11 + $0x40] sm:$0xff]  ;;  %v1008_v21 = vld [vmem:[%s1918_s11 + $0x18] sm:$0xff] }
 0x623   : > { %v880_v51 = vadd.f32 %v1237_v50, %v872_v49  ;;  %1313 = vmatprep.subr.mxu0 %v1540_v60  ;;  %1322 = vmatprep.subr.mxu1 %v1540_v60  ;;  %v1009_v20 = vld [vmem:[%s1918_s11 + $0x20] sm:$0xff]  ;;  %v1007_v22 = vld [vmem:[%s1918_s11 + $0x10] sm:$0xff]  ;;  %v1006_v23 = vld [vmem:[%s1918_s11 + $0x8] sm:$0xff] }
 0x624   : > { %1314 = vmatpush3.msra.mxu0 %v912_v63  ;;  %1323 = vmatpush3.msra.mxu1 %v1018_v11  ;;  %v1005_v24 = vld [vmem:[%s1918_s11] sm:$0xff] }
 0x625   : > { %v1754_v52 = vadd.f32 %v880_v51, %v871_v48  ;;  %1324 = vmatprep.subr.mxu1 %v1540_v60  ;;  %v1240_v25 = vld [vmem:[%s1917_s10] ss:$0 sm:$0xff] }
 0x626   : > { %1325 = vmatpush3.msra.mxu1 %v1017_v12  ;;  %v1242_v38 = vld [vmem:[%s1951_s13] ss:$0 sm:$0xff] }
 0x627   : > { %v882_v53 = vsel %vm549_vm2, %v1754_v52, 0.0  ;;  %1326 = vmatprep.subr.mxu1 %v1540_v60 }
 0x628   : > { %883 = vadd.xlane.f32.xlu0 %v882_v53  ;;  %1327 = vmatpush3.msra.mxu1 %v1016_v13 }
 0x629   : > { %1328 = vmatprep.subr.mxu1 %v1540_v60 }
 0x62a   : > { %1329 = vmatpush3.msra.mxu1 %v1015_v14 }
 0x62b   : > { %1330 = vmatprep.subr.mxu1 %v1540_v60 }
 0x62c   : > { %1331 = vmatpush3.msra.mxu1 %v1014_v15 }
 0x62d   : > { %1332 = vmatprep.subr.mxu1 %v1540_v60 }
 0x62e   : > { %1333 = vmatpush3.msra.mxu1 %v1013_v16 }
 0x62f   : > { %1334 = vmatprep.subr.mxu1 %v1540_v60 }
 0x630   : > { %1335 = vmatpush3.msra.mxu1 %v1012_v17 }
 0x631   : > { %1336 = vmatprep.subr.mxu1 %v1540_v60 }
 0x632   : > { %1337 = vmatpush3.msra.mxu1 %v1011_v18 }
 0x633   : > { %1338 = vmatprep.subr.mxu1 %v1540_v60 }
 0x634   : > { %1339 = vmatpush3.msra.mxu1 %v1010_v19 }
 0x635   : > { %1340 = vmatprep.subr.mxu1 %v1540_v60 }
 0x636   : > { %1341 = vmatpush3.msra.mxu1 %v1009_v20 }
 0x637   : > { %1342 = vmatprep.subr.mxu1 %v1540_v60 }
 0x638   : > { %1343 = vmatpush3.msra.mxu1 %v1008_v21 }
 0x639   : > { %1344 = vmatprep.subr.mxu1 %v1540_v60 }
 0x63a   : > { %1345 = vmatpush3.msra.mxu1 %v1007_v22 }
 0x63b   : > { %1346 = vmatprep.subr.mxu1 %v1540_v60 }
 0x63c   : > { %1347 = vmatpush3.msra.mxu1 %v1006_v23 }
 0x63d   : > { %1348 = vmatprep.subr.mxu1 %v1540_v60 }
 0x63e   : > { %1349 = vmatpush3.msra.mxu1 %v1005_v24 }
 0x6b1   : > { %v884_v54 = vpop.xlane.xlu0 %883 }
 0x6b2   : > { %v886_v55 = vmul.f32 0.03125, %v884_v54 }
 0x6b4   : > { %v887_v56 = vsub.f32 %v1754_v52, %v886_v55 }
 0x6b6   : > { %v888_v57 = vmul.f32 %v887_v56, %v887_v56 }
 0x6b8   : > { %v889_v58 = vsel %vm549_vm2, %v888_v57, 0.0 }
 0x6b9   : > { %890 = vadd.xlane.f32.xlu0 %v889_v58 }
 0x742   : > { %v891_v0 = vpop.xlane.xlu0 %890 }
 0x743   : > { %v892_v1 = vmul.f32 0.03125, %v891_v0 }
 0x745   : > { %v893_v2 = vadd.f32 1e-06, %v892_v1 }
 0x747   : > { %1437 = vrsqrt.f32 %v893_v2 }
 0x754   : > { %v1438_v3 = vpop.eup %1437 }
 0x755   : > { %v895_v5 = vmul.f32 %v1438_v3, %v887_v56 }
 0x757   : > { %v903_v7 = vmul.f32 %v1238_v4, %v895_v5 }
 0x759   : > { %v911_v8 = vadd.f32 %v1239_v6, %v903_v7 }
 0x75b   : > { %1316 = vmatmul.mubr.msk.f32.vlgmr.msra.gmra.mxu0 %vm549_vm2, %v911_v8 }
 0x81b   : > { %v992_v26 = vpop.f32.mrf.mxu0 }
 0x81c   : > { %v993_v27 = vadd.f32 %v1240_v25, %v992_v26 }
 0x81d   : > { %v1317_v28 = vpop.f32.mrf.mxu0 }
 0x81e   : > { %v997_v29 = vmul.f32 %v993_v27, %v993_v27  ;;  %v996_v35 = vmul.f32 0.5, %v993_v27 }
 0x820   : > { %v998_v30 = vmul.f32 %v997_v29, %v993_v27 }
 0x822   : > { %v999_v31 = vmul.f32 0.044715, %v998_v30 }
 0x824   : > { %v1000_v32 = vadd.f32 %v999_v31, %v993_v27 }
 0x826   : > { %v1001_v33 = vmul.f32 0.7978846, %v1000_v32 }
 0x828   : > { %1439 = vtanh.f32 %v1001_v33 }
 0x835   : > { %v1440_v34 = vpop.eup %1439 }
 0x836   : > { %v1003_v36 = vadd.f32 1.0, %v1440_v34 }
 0x838   : > { %v1004_v37 = vmul.f32 %v1003_v36, %v996_v35 }
 0x83a   : > { %1351 = vmatmul.mubr.f32.vlgmr.msra.gmra.mxu1 %v1004_v37 }
 0x8fa   : > { %v1094_v39 = vpop.f32.mrf.mxu1 }
 0x8fb   : > { %v1095_v40 = vadd.f32 %v1242_v38, %v1094_v39 }
 0x8fc   : > { %v1352_v41 = vpop.f32.mrf.mxu1 }
 0x8fd   : > { %v1098_v42 = vadd.f32 %v1095_v40, %v1754_v52 }
 0x8ff   : > { %1099 = vst.msk [vmem:[%s482_s12] sm:$0xff] %vm549_vm2, %v1098_v42 }
 0x900 PF: > { %s1952_s19 = sld [smem:[#allocation10_spill]]  ;;  %s1114_s18 = sshll.u32 %s482_s12, 4  ;;  %s1115_s18 = int_to_ptr.vmem [resolvable:$true] %s1114_s18 }
 0x901   : > { %s1953_s21 = sld [smem:[#allocation8_spill]]  ;;  %s1441_s27 = scalar_lea.vmem %s1115_s18, 128 }
 0x902   : > { %s1955_s22 = sld [smem:[#allocation20_spill]]  ;;  %p1442_p2 = scmp.ne.s32.totalorder %s1115_s18, %s1441_s27 }
 0x903   : > { %s1542_s29 = smov [#allocation4]  }
 0x904   : > { %p1443_p4 = pnand %p1442_p2, %p1662_p3  ;;  %s1445_s14 = sshll.u32 %s1542_s29, 4  ;;  %s1446_s14 = int_to_ptr.vmem [resolvable:$false] %s1445_s14 }
 0x905   : > { %s1447_s15 = scalar_lea.vmem %s1446_s14, 256  ;;  %p1448_p6 = scmp.lt.s32.totalorder %s1115_s18, %s1446_s14 }
 0x906   : > { %s1244_s30 = sshll.u32 %s1952_s19, 7  ;;  %p1444_p5 = pneg %p1443_p4 }
 0x907   : > { %s1956_s25 = sand.u32 1, %s1953_s21   ;;  %p1449_p7 = scmp.lt.s32.totalorder %s1447_s15, %s1441_s27 }
 0x908   : > { %s1112_s23 = scalar_lea.hbm %s1955_s22, %s1244_s30  ;;  %s1101_s26 = scalar_lea.sflag [#allocation5], %s1956_s25 }
 0x909   : > { %p1450_p8 = por %p1449_p7, %p1448_p6 }
 0x90b   : > { %p1451_p10 = pnand %p1450_p8, %p1444_p5 }
 0x90d   : > { %1454 = shalt.err (!%p1451_p10)
}
 0x90e   : > { %s1455_s20 = scalar_lea.hbm %s1112_s23, 128  ;;  %s1459_s13 = scalar_lea.hbm %s1955_s22, 256 }
 0x90f   : > { %p1456_p11 = scmp.ne.s32.totalorder %s1112_s23, %s1455_s20  ;;  %p1460_p0 = scmp.lt.s32.totalorder %s1112_s23, %s1955_s22 }
 0x910   : > { %p1461_p1 = scmp.lt.s32.totalorder %s1459_s13, %s1455_s20 }
 0x911   : > { %p1457_p12 = pnand %p1456_p11, %p1662_p3 }
 0x912   : > { %p1462_p2 = por %p1461_p1, %p1460_p0 }
 0x913   : > { %p1458_p13 = pneg %p1457_p12 }
 0x915   : > { %p1463_p4 = pnand %p1462_p2, %p1458_p13 }
 0x917   : > { %1466 = shalt.err (!%p1463_p4)
}
 0x918   : > { %1353 = dma.vmem_to_hbm [thread:$0]  (%p1662_p3), %s1115_s18, 128, %s1112_s23, %s1101_s26  }
 0x919 PF: > { %s1957_s30 = sld [smem:[#allocation13_spill]] }
 0x91a   : > { %s1958_s24 = sld [smem:[#allocation7_spill]] }
 0x91f   : > { %p1359_p5 = scmp.ge.s32.totalorder %s1957_s30, 2 }
 0x920   : > { %s1126_s25 = sand.u32 1, %s1958_s24  }
 0x921   : > { %p1356_p6 = pnand %p1359_p5, %p1672_p9  ;;  %s1127_s27 = scalar_lea.sflag [#allocation5], %s1126_s25 }
 0x923   : > { %p1357_p7 = pneg %p1356_p6 }
 0x925   : > { %1500 = dma.done.wait (%p1357_p7), %s1127_s27, 128  }
 0x926   : > { %1502 = vsyncadd (%p1357_p7), %s1127_s27, 4294967168  ;;  %s26_s15 = sadd.s32 1, %s1957_s30   ;;  %s1960_s25 = sld [smem:[#allocation8_spill]] }
 0x927   : > { %p23_p8 = scmp.ge.s32.totalorder %s26_s15, 10   ;;  %s1961_s26 = sld [smem:[#allocation9_spill]] }
 0x928   : > { %s1962_s27 = sld [smem:[#allocation18_spill]] }
 0x929   : > { %s1963_s28 = sld [smem:[#allocation11_spill]]  ;;  %25 = sbr.rel (!%p23_p8) target bundleno = 8 (0x8), region = 124 }
 0x92a   : > { %s1964_s29 = sld [smem:[#allocation12_spill]] }
 0x92b   : > { %s1965_s30 = sld [smem:[#allocation14_spill]] }
 0x92c   : > { %s1966_s14 = sld [smem:[#allocation16_spill]] }
 0x92e   :  { %1132 = vsyncpa [#allocation5], 1 }
 0x92f   :  { %1134 = vsyncpa [#allocation5 + $0x1], 1 }

</bundles_post_ra>
